<compile_context>
chip_gen: v7x
topology: tpu7x:2x2x1
jax: 0.10.0
libtpu: 0.0.40
codegen_flags: <defaults>
</compile_context>

<pallas_src>
import functools

import jax
import jax.numpy as jnp
import numpy as np
from jax import lax
from jax.experimental import pallas as pl
from jax.experimental.pallas import tpu as pltpu

F32 = jnp.float32
BF16 = jnp.bfloat16
I8 = jnp.int8
_MASK_NEG = 1e30


# ---------------------------------------------------------------------------
# MXU helpers: bf16 operands, f32 accumulation.
# ---------------------------------------------------------------------------
def _mxu(a, b):
    return jnp.dot(a.astype(BF16), b.astype(BF16), preferred_element_type=F32)


def _mxu_nt(a, b):
    """a @ b.T (contract last dims) with bf16 operands / f32 accumulation."""
    return lax.dot_general(a.astype(BF16), b.astype(BF16),
                           dimension_numbers=(((1,), (1,)), ((), ())),
                           preferred_element_type=F32)


# ---------------------------------------------------------------------------
# Shared per-row-block math (used by both the Pallas kernels and the pure-JAX
# reference so the numerics line up; only the softmax reciprocal differs).
# ---------------------------------------------------------------------------
def _gat_block(a_blk, x_blk, xp_blk, xp_full, alpha_src, dis_blk,
               bg, adst, lnw, lnb, w3, recip):
    """GATConv (heads=1, eval) + residual + LayerNorm + dis * (h @ W3)."""
    af = a_blk.astype(F32)                              # one int8 -> f32 widen (mask only)

    # attention logits e[t, s] = a_dst . xp[t] + a_src . xp[s]   (f32)
    alpha_dst = jnp.sum(xp_blk.astype(F32) * adst, axis=-1, keepdims=True)  # [TM, 1]
    e = alpha_dst + alpha_src                                               # [TM, N]
    e = jnp.maximum(e, 0.2 * e)                         # LeakyReLU(0.2)
    e = e + (af - 1.0) * _MASK_NEG                      # arithmetic mask
    e = e - jnp.max(e, axis=-1, keepdims=True)
    p = jnp.exp(e)                                      # masked entries underflow to 0
    attn = p * recip(jnp.sum(p, axis=-1, keepdims=True))  # per-target softmax

    gat = _mxu(attn, xp_full) + bg                                          # [TM, C]

    # residual + LayerNorm (eps=1e-5, biased variance, torch semantics)
    h = gat + x_blk
    mu = jnp.mean(h, axis=-1, keepdims=True)
    var = jnp.mean((h - mu) ** 2, axis=-1, keepdims=True)
    h = (h - mu) * lax.rsqrt(var + 1e-5) * lnw + lnb

    # pre-scaled GCN3 message: dis[i] * (h[i] @ W3)
    return dis_blk * _mxu(h, w3)                                            # [TM, 2C]


def _gcn_block(a_blk, msg_full, bias, dis_blk, w_next, relu):
    """g[t] = dis[t] * (A[t,:] @ msg) + b ; optional ReLU ; optional pre-scaled
    projection dis * (g @ w_next) for the next GCN layer."""
    g = dis_blk * _mxu(a_blk.astype(F32), msg_full) + bias
    if relu:
        g = jnp.maximum(g, 0.0)
    if w_next is not None:
        g = dis_blk * _mxu(g, w_next)
    return g


# ---------------------------------------------------------------------------
# Pallas kernels (each gridded over target-node row blocks of size TM).
# ---------------------------------------------------------------------------
def _proj_kernel(x_ref, wg_ref, xp_ref):
    """xp = x @ Wg, row-block tiled, stored bf16."""
    xp_ref[...] = _mxu(x_ref[...], wg_ref[...]).astype(xp_ref.dtype)


def _gat_kernel(a_ref, x_ref, xpb_ref, xpf_ref, asrc_ref, dis_ref,
                slab_ref, w3_ref, hs3_ref):
    """GAT attention + residual + LayerNorm + dis*(h @ W3) for one row block.
    # TODO(synk): for very large N, also tile the source axis with an online
    # (flash-style) softmax instead of a full [TM, N] row tile."""
    slab = slab_ref[...]                       # packed [8, C]: bg, adst, lnw, lnb
    hs3_ref[...] = _gat_block(
        a_ref[...], x_ref[...], xpb_ref[...], xpf_ref[...],
        asrc_ref[...], dis_ref[...],
        slab[0:1], slab[1:2], slab[2:3], slab[3:4],
        w3_ref[...],
        recip=lambda d: pl.reciprocal(d, approx=True)).astype(hs3_ref.dtype)


def _gcn_kernel(relu, has_w, *refs):
    """Symmetric-normalized GCN aggregation for one row block (optionally fused
    with ReLU and the next layer's pre-scaled projection)."""
    if has_w:
        a_ref, msg_ref, b_ref, dis_ref, w_ref, out_ref = refs
        w = w_ref[...]
    else:
        a_ref, msg_ref, b_ref, dis_ref, out_ref = refs
        w = None
    out_ref[...] = _gcn_block(a_ref[...], msg_ref[...], b_ref[...],
                              dis_ref[...], w, relu).astype(out_ref.dtype)


def _gram_kernel(q_ref, g4_ref, out_ref):
    """out[:, block j] = q @ g4[block j].T   (q = g4[idx], gathered once in XLA)."""
    out_ref[...] = _mxu_nt(q_ref[...], g4_ref[...])


# ---------------------------------------------------------------------------
# Host-side wrapper.
# ---------------------------------------------------------------------------
def _dense_adjacency(edge_index, n, n_pad):
    """A[dst, src] = 1 plus self loops (PyG add_self_loops), stored int8.
    Padded rows/cols get a self loop only, so deg >= 1 everywhere (no inf/NaN)
    and padded sources never contribute to real rows (their columns are 0).
    # TODO(synk): for large sparse graphs, keep edge_index in CSR form and DMA
    # only neighbor blocks via scalar prefetch instead of densifying to N x N."""
    src, dst = edge_index[0], edge_index[1]
    a = jnp.zeros((n_pad, n_pad), I8).at[dst, src].set(1)
    return jnp.maximum(a, jnp.eye(n_pad, dtype=I8))


def _vmem_limit_bytes():
    """~3/4 of the chip's VMEM (<= 100 MiB): ~48 MiB on v7x, ~96 MiB on v5e/v6e."""
    try:
        cap = int(pltpu.get_tpu_info().vmem_capacity_bytes)
        return int(min(100 * 1024 * 1024, max(32 * 1024 * 1024, (cap * 3) // 4)))
    except Exception:
        return 48 * 1024 * 1024


def gat_forward(x, edge_index, current_node_indices, params, *, block_rows=128):
    n, c = x.shape
    m = int(current_node_indices.shape[0])
    c2, c4 = 2 * c, 4 * c

    tm = block_rows
    nb = max(int(pl.cdiv(n, tm)), 1)
    if nb > 1 and nb % 2:
        nb += 1                 # even grid keeps both v7x TensorCores busy
    n_pad = nb * tm

    a = _dense_adjacency(edge_index, n, n_pad)                      # int8 [Np, Np]
    x_p = x if n_pad == n else jnp.zeros((n_pad, c), F32).at[:n].set(x)

    # deg^-1/2 (self-loops included) precomputed once.
    dis = lax.rsqrt(jnp.sum(a.astype(F32), axis=1, keepdims=True))  # [Np, 1] f32

    # Pack the four [1, C] GAT / LayerNorm params into one [8, C] slab (1 DMA).
    slab = jnp.concatenate(
        [params['bg'], params['adst'], params['lnw'], params['lnb'],
         jnp.zeros((4, c), F32)], axis=0)

    cparams = pltpu.CompilerParams(
        dimension_semantics=("parallel",),
        vmem_limit_bytes=_vmem_limit_bytes())

    row = lambda i: (i, 0)      # row-block tiled arrays
    full = lambda i: (0, 0)     # full-resident (O(N*C) or parameter) arrays

    # ---- stage 0: xp = x @ Wg (stored bf16) --------------------------------
    xp = pl.pallas_call(
        _proj_kernel,
        grid=(nb,),
        in_specs=[pl.BlockSpec((tm, c), row), pl.BlockSpec((c, c), full)],
        out_specs=pl.BlockSpec((tm, c), row),
        out_shape=jax.ShapeDtypeStruct((n_pad, c), BF16),
        compiler_params=cparams,
    )(x_p, params['wg'])

    # alpha_src[s] = a_src . xp[s], computed once (tiny XLA reduce over [N, C]).
    alpha_src = jnp.sum(xp.astype(F32) * params['asrc'], axis=-1).reshape(1, n_pad)

    # ---- stage 1: GAT attention + residual + LayerNorm + dis*(h @ W3) ------
    hs3 = pl.pallas_call(
        _gat_kernel,
        grid=(nb,),
        in_specs=[pl.BlockSpec((tm, n_pad), row),      # A (int8)
                  pl.BlockSpec((tm, c), row),          # x residual
                  pl.BlockSpec((tm, c), row),          # xp rows of this block
                  pl.BlockSpec((n_pad, c), full),      # xp (all sources, bf16)
                  pl.BlockSpec((1, n_pad), full),      # alpha_src
                  pl.BlockSpec((tm, 1), row),          # deg^-1/2
                  pl.BlockSpec((8, c), full),          # packed params
                  pl.BlockSpec((c, c2), full)],        # W3
        out_specs=pl.BlockSpec((tm, c2), row),
        out_shape=jax.ShapeDtypeStruct((n_pad, c2), BF16),
        compiler_params=cparams,
    )(a, x_p, xp, xp, alpha_src, dis, slab, params['w3'])

    # ---- stage 2: GCN3 aggregation + ReLU, fused with dis*(g3 @ W4) --------
    gs4 = pl.pallas_call(
        functools.partial(_gcn_kernel, True, True),
        grid=(nb,),
        in_specs=[pl.BlockSpec((tm, n_pad), row),
                  pl.BlockSpec((n_pad, c2), full),
                  pl.BlockSpec((1, c2), full),
                  pl.BlockSpec((tm, 1), row),
                  pl.BlockSpec((c2, c4), full)],
        out_specs=pl.BlockSpec((tm, c4), row),
        out_shape=jax.ShapeDtypeStruct((n_pad, c4), BF16),
        compiler_params=cparams,
    )(a, hs3, params['b3'], dis, params['w4'])

    # ---- stage 3: GCN4 aggregation -----------------------------------------
    g4 = pl.pallas_call(
        functools.partial(_gcn_kernel, False, False),
        grid=(nb,),
        in_specs=[pl.BlockSpec((tm, n_pad), row),
                  pl.BlockSpec((n_pad, c4), full),
                  pl.BlockSpec((1, c4), full),
                  pl.BlockSpec((tm, 1), row)],
        out_specs=pl.BlockSpec((tm, c4), row),
        out_shape=jax.ShapeDtypeStruct((n_pad, c4), BF16),
        compiler_params=cparams,
    )(a, gs4, params['b4'], dis)

    # ---- stage 4: out = g4[idx] @ g4.T, tiled over key blocks --------------
    q = g4[current_node_indices.astype(jnp.int32)]      # [M, 4C] bf16 (XLA gather)
    out = pl.pallas_call(
        _gram_kernel,
        grid=(nb,),
        in_specs=[pl.BlockSpec((m, c4), full),           # query rows
                  pl.BlockSpec((tm, c4), row)],          # streamed key block
        out_specs=pl.BlockSpec((m, tm), lambda j: (0, j)),
        out_shape=jax.ShapeDtypeStruct((m, n_pad), F32),
        compiler_params=cparams,
    )(q, g4)

    return out[:, :n].reshape(-1)                        # .view(-1)


# ---------------------------------------------------------------------------
# Pure-JAX reference (identical bf16 cast/round points; plain softmax divide).
# ---------------------------------------------------------------------------
def _reference_forward(x, a_int8, idx, params):
    n = x.shape[0]
    dis = lax.rsqrt(jnp.sum(a_int8.astype(F32), axis=1, keepdims=True))
    xp = _mxu(x, params['wg']).astype(BF16)
    alpha_src = jnp.sum(xp.astype(F32) * params['asrc'], axis=-1).reshape(1, n)
    hs3 = _gat_block(a_int8, x, xp, xp, alpha_src, dis,
                     params['bg'], params['adst'], params['lnw'], params['lnb'],
                     params['w3'], recip=lambda d: 1.0 / d).astype(BF16)
    gs4 = _gcn_block(a_int8, hs3, params['b3'], dis, params['w4'],
                     relu=True).astype(BF16)
    g4 = _gcn_block(a_int8, gs4, params['b4'], dis, None,
                    relu=False).astype(BF16)
    return _mxu_nt(g4[idx], g4).reshape(-1)


def init_params(key, c):
    """Deterministic synthetic parameters matching the module's __init__ shapes
    (heads=1, so GATConv out = C; GCN3: C->2C; GCN4: 2C->4C)."""
    ks = jax.random.split(key, 8)
    rnd = lambda k, shape: 0.1 * jax.random.normal(k, shape, F32)
    return dict(
        wg=rnd(ks[0], (c, c)), bg=rnd(ks[1], (1, c)),
        asrc=rnd(ks[2], (1, c)), adst=rnd(ks[3], (1, c)),
        lnw=jnp.ones((1, c), F32), lnb=jnp.zeros((1, c), F32),
        w3=rnd(ks[4], (c, 2 * c)), b3=rnd(ks[5], (1, 2 * c)),
        w4=rnd(ks[6], (2 * c, 4 * c)), b4=rnd(ks[7], (1, 4 * c)))


if __name__ == "__main__":
    # Small but lane-aligned shapes: channel dims (C, 2C, 4C) and N are
    # multiples of 128 so every MXU operand / store is lane-dense, and the
    # row-block grid has an even number of blocks.
    N, C, M = 256, 128, 4
    key = jax.random.PRNGKey(0)
    kx, kp = jax.random.split(key)

    x = jax.random.normal(kx, (N, C), F32)

    # Deterministic bidirectional ring graph: 2N directed edges.
    fwd = jnp.arange(N, dtype=jnp.int32)
    bwd = (fwd + 1) % N
    edge_index = jnp.stack([jnp.concatenate([fwd, bwd]),
                            jnp.concatenate([bwd, fwd])], axis=0)        # [2, 2N]

    current_node_indices = jnp.array([0, 7, 100, 255], dtype=jnp.int32)  # [M]
    params = init_params(kp, C)

    out = gat_forward(x, edge_index, current_node_indices, params)
    out = jax.block_until_ready(out)
    assert out.shape == (M * N,)

    # Reference check.  All bf16 casts / storage-rounding points are shared
    # with the kernel; the only drift source is the EUP approximate reciprocal
    # used for the softmax denominator, hence the loosened tolerance.
    A = _dense_adjacency(edge_index, N, N)
    ref = _reference_forward(x, A, current_node_indices, params)
    np.testing.assert_allclose(np.asarray(out), np.asarray(ref),
                               rtol=1e-2, atol=1e-2)

    print("KERNEL_OK")
</pallas_src>

<mosaic_0001>
module attributes {stable_mosaic.version = 11 : i64} {
  func.func @_proj_kernel(%arg0: i32, %arg1: memref<128x128xf32, #tpu.memory_space<vmem>>, %arg2: memref<128x128xf32, #tpu.memory_space<vmem>>, %arg3: memref<128x128xbf16, #tpu.memory_space<vmem>>) attributes {dimension_semantics = [#tpu.dimension_semantics<parallel>], iteration_bounds = array<i64: 2>, scalar_prefetch = 0 : i64, scratch_operands = 0 : i64, tpu.core_type = #tpu.core_type<tc>, window_params = [{transform_indices = @transform_0, window_bounds = array<i64: 128, 128>}, {pipeline_mode = #tpu.pipeline_mode<synchronous>, transform_indices = @transform_1, window_bounds = array<i64: 128, 128>}, {transform_indices = @transform_2, window_bounds = array<i64: 128, 128>}]} {
    %c0 = arith.constant 0 : index
    %c0_0 = arith.constant 0 : index
    %0 = vector.load %arg1[%c0, %c0_0] : memref<128x128xf32, #tpu.memory_space<vmem>>, vector<128x128xf32>
    %c0_1 = arith.constant 0 : index
    %c0_2 = arith.constant 0 : index
    %1 = vector.load %arg2[%c0_1, %c0_2] : memref<128x128xf32, #tpu.memory_space<vmem>>, vector<128x128xf32>
    %2 = arith.truncf %0 : vector<128x128xf32> to vector<128x128xbf16>
    %3 = arith.truncf %1 : vector<128x128xf32> to vector<128x128xbf16>
    %cst = arith.constant dense<0.000000e+00> : vector<128x128xf32>
    %4 = tpu.matmul %2, %3, %cst {dimension_numbers = #tpu.dot_dimension_numbers<[1], [0], [0], [1], [0, 0, 1, 1], [], []>} : vector<128x128xbf16>, vector<128x128xbf16>, vector<128x128xf32> -> vector<128x128xf32>
    %5 = arith.truncf %4 : vector<128x128xf32> to vector<128x128xbf16>
    %c0_3 = arith.constant 0 : index
    %c0_4 = arith.constant 0 : index
    %6 = vector.load %arg3[%c0_3, %c0_4] : memref<128x128xbf16, #tpu.memory_space<vmem>>, vector<128x128xbf16>
    tpu.vector_store %arg3[%c0_3, %c0_4], %5 {strides = array<i32>} : memref<128x128xbf16, #tpu.memory_space<vmem>>, vector<128x128xbf16>,
    return
  }
  func.func @transform_0(%arg0: i32) -> (i32, i32) {
    %c0_i32 = arith.constant 0 : i32
    %c0_i32_0 = arith.constant 0 : i32
    return %arg0, %c0_i32 : i32, i32
  }
  func.func @transform_1(%arg0: i32) -> (i32, i32) {
    %c0_i32 = arith.constant 0 : i32
    %c0_i32_0 = arith.constant 0 : i32
    %c0_i32_1 = arith.constant 0 : i32
    return %c0_i32, %c0_i32_0 : i32, i32
  }
  func.func @transform_2(%arg0: i32) -> (i32, i32) {
    %c0_i32 = arith.constant 0 : i32
    %c0_i32_0 = arith.constant 0 : i32
    return %arg0, %c0_i32 : i32, i32
  }
}

</mosaic_0001>

<bundles_post_ra>
// kernel: tpu_custom_call.1
= control target key start
LH: loop header
LB: loop body
LE: loop exit
PB: predicated region body
PF: predicated region fallthrough
CT: control target
= control target key end

     0   :  { %7 = vsyncpa [#allocation3], 0  ;;  %s1102_s0 = inlined_call_operand.hbm [shape: f32[256,128], index: 0, kind: input, shape index: {}]   ;;  %s1103_s1 = inlined_call_operand.hbm [shape: f32[128,128], index: 1, kind: input, shape index: {}]   ;;  %s1104_s2 = inlined_call_operand.hbm [shape: bf16[256,128], index: 2, kind: output, shape index: {}]  }
   0x1   :  { %9 = vsyncpa [#allocation3 + $0x1], 0 }
   0x2   :  { %10 = vsyncpa [#allocation6], 0 }
   0x3   :  { %11 = vsyncpa [#allocation4], 0 }
   0x4   :  { %13 = vsyncpa [#allocation4 + $0x1], 0  ;;  %s876_s9 = smov 0   ;;  %s878_s10 = smov 0  }
   0x5   :  { %s880_s11 = smov 0   ;;  %s882_s12 = smov 0  }
   0x6 LB: > { %s897_s13 = sadd.s32 4294967295, %s852_s12   ;;  %s502_s14 = sadd.s32 4294967294, %s852_s12   ;;  %s852_s12 = sphi %s882_s12, %s1124_s12   ;;  %s848_s11 = sphi %s880_s11, %s1123_s11   ;;  %s844_s10 = sphi %s878_s10, %s1122_s10   ;;  %s840_s9 = sphi %s876_s9, %s1121_s9  }
   0x7   : > { %p39_p0 = scmp.ne.s32.totalorder %s844_s10, %s840_s9  ;;  %p1105_p1 = scmp.eq.s32.totalorder %s897_s13, 0 }
   0x8   : > { %p90_p3 = scmp.eq.s32.totalorder %s502_s14, 1  ;;  %p503_p5 = scmp.ge.s32.totalorder %s852_s12, 1 }
   0x9   : > { %p906_p4 = por %p1105_p1, %p39_p0  ;;  %p97_p7 = scmp.lt.s32.totalorder %s852_s12, 3 }
   0xa   : > { %p911_p6 = por %p90_p3, %p39_p0  ;;  %s854_s18 = smov [#allocation5]  }
   0xb   : > { %s1108_s15 = scalar_select %p906_p4, 1, 0 }
   0xc   : > { %s1109_s16 = scalar_select %p911_p6, 1, 0 }
   0xd   : > { %p916_p8 = pnand %p503_p5, %p97_p7  ;;  %s109_s19 = sshll.u32 %s854_s18, 4  ;;  %s920_s19 = int_to_ptr.vmem [resolvable:$true] %s109_s19 }
   0xe   : > { %s932_s21 = sadd.s32 1, %s852_s12   ;;  %s26_s22 = sadd.s32 1, %s848_s11 }
   0xf   : > { %s1110_s17 = scalar_select %p916_p8, 1, 0 }
  0x10   : > { %p671_p9 = pneg %p916_p8  ;;  %s23_s23 = ssub.s32 %s852_s12, %s932_s21 }
  0x11   : > { %s724_s26 = scalar_lea.hbm %s1103_s1, 2048 }
  0x12   : > { %p927_p11 = pnand %p671_p9, %p1105_p1  ;;  %p725_p12 = scmp.ne.s32.totalorder %s1103_s1, %s724_s26 }
  0x13   : > { %p731_p5 = scmp.lt.u32.totalorder %s724_s26, %s1103_s1 }
  0x14   : > { %p726_p13 = pneg %p927_p11 }
  0x16   : > { %p727_p0 = pnand %p726_p13, %p725_p12 }
  0x18   : > { %p728_p3 = pneg %p727_p0 }
  0x1a   : > { %p733_p7 = pnand %p731_p5, %p728_p3 }
  0x1c   : > { %736 = shalt.err (!%p733_p7)
}
  0x1d   : > { %s737_s3 = scalar_lea.vmem %s920_s19, 2048  ;;  %p745_p2 = scmp.lt.s32.totalorder %s920_s19, %s920_s19 }
  0x1e   : > { %p738_p9 = scmp.ne.s32.totalorder %s920_s19, %s737_s3  ;;  %p746_p6 = scmp.lt.s32.totalorder %s737_s3, %s737_s3 }
  0x20   : > { %p740_p10 = pnand %p738_p9, %p726_p13  ;;  %p747_p4 = por %p746_p6, %p745_p2 }
  0x22   : > { %p741_p1 = pneg %p740_p10 }
  0x24   : > { %p748_p8 = pnand %p747_p4, %p741_p1 }
  0x26   : > { %751 = shalt.err (!%p748_p8)
}
  0x27   : > { %s855_s4 = smov 128   ;;  %s856_s5 = smov 8  }
  0x28   : > { %674 = dma.hbm_to_vmem [thread:$0]  (!%p927_p11), %s1103_s1, 2048, %s920_s19, [#allocation6], %s855_s4, %s855_s4, %s856_s5  }
  0x29   : > { %p24_p1 = scmp.eq.s32.totalorder %s23_s23, 0  ;;  %p33_p2 = scmp.ne.s32.totalorder %s848_s11, %s844_s10 }
  0x2a   : > { %p34_p4 = scmp.eq.s32.totalorder %s852_s12, 0  ;;  %p684_p6 = scmp.lt.s32.totalorder %s852_s12, 2 }
  0x2b   : > { %s966_s8 = scalar_select %p24_p1, %s848_s11, %s26_s22  }
  0x2c   : > { %p35_p8 = por %p34_p4, %p33_p2  ;;  %p1112_p10 = scmp.eq.s32.totalorder %s897_s13, 1 }
  0x2d   : > { %s123_s18 = sand.u32 1, %s848_s11   ;;  %s534_s20 = sshll.u32 %s852_s12, 11 }
  0x2e   : > { %p970_p12 = por %p1112_p10, %p33_p2  ;;  %s506_s24 = sshll.u32 %s123_s18, 7 }
  0x2f   : > { %s979_s27 = scalar_lea.hbm %s1102_s0, %s534_s20  ;;  %s127_s19 = scalar_lea.vmem [#allocation2], %s506_s24 }
  0x30   : > { %s134_s22 = sshll.u32 %s127_s19, 4  ;;  %p981_p11 = pnand %p684_p6, %p35_p8  ;;  %s985_s22 = int_to_ptr.vmem [resolvable:$true] %s134_s22 }
  0x31   : > { %s987_s28 = scalar_lea.sflag [#allocation3], %s123_s18  ;;  %s752_s29 = scalar_lea.hbm %s979_s27, 2048 }
  0x32   : > { %p753_p13 = scmp.ne.s32.totalorder %s979_s27, %s752_s29  ;;  %p754_p0 = pneg %p981_p11 }
  0x33   : > { %s757_s6 = scalar_lea.hbm %s1102_s0, 4096  ;;  %p758_p7 = scmp.lt.u32.totalorder %s979_s27, %s1102_s0 }
  0x34   : > { %p755_p3 = pnand %p754_p0, %p753_p13  ;;  %p759_p9 = scmp.lt.u32.totalorder %s757_s6, %s752_s29 }
  0x35   : > { %p761_p2 = scmp.lt.u32.totalorder %s752_s29, %s979_s27 }
  0x36   : > { %p756_p5 = pneg %p755_p3  ;;  %p760_p1 = por %p759_p9, %p758_p7 }
  0x38   : > { %p762_p4 = por %p761_p2, %p760_p1 }
  0x3a   : > { %p763_p6 = pnand %p762_p4, %p756_p5 }
  0x3c   : > { %766 = shalt.err (!%p763_p6)
}
  0x3d   : > { %s767_s18 = scalar_lea.vmem %s985_s22, 2048  ;;  %s857_s24 = smov [#allocation2]  }
  0x3e   : > { %p768_p8 = scmp.ne.s32.totalorder %s985_s22, %s767_s18  ;;  %s772_s25 = sshll.u32 %s857_s24, 4  ;;  %s773_s25 = int_to_ptr.vmem [resolvable:$false] %s772_s25 }
  0x3f   : > { %s774_s26 = scalar_lea.vmem %s773_s25, 4096  ;;  %p775_p3 = scmp.lt.s32.totalorder %s985_s22, %s773_s25 }
  0x40   : > { %p770_p10 = pnand %p768_p8, %p754_p0  ;;  %p776_p7 = scmp.lt.s32.totalorder %s774_s26, %s767_s18 }
  0x42   : > { %p771_p13 = pneg %p770_p10  ;;  %p777_p9 = por %p776_p7, %p775_p3 }
  0x44   : > { %p778_p1 = pnand %p777_p9, %p771_p13 }
  0x46   : > { %781 = shalt.err (!%p778_p1)
}
  0x47   : > { %678 = dma.hbm_to_vmem [thread:$0]  (!%p981_p11), %s979_s27, 2048, %s985_s22, %s987_s28, %s855_s4, %s855_s4, %s856_s5  }
  0x48   : > { %p1115_p0 = scmp.ne.s32.totalorder %s1110_s17, 0 }
  0x49   : > { %s1021_s19 = sand.u32 (!%p1115_p0), 1, %s844_s10   ;;  %p1116_p5 = scmp.ne.s32.totalorder (!%p1115_p0), %s1108_s15, 0 }
  0x4a   : > { %146 = sbr.rel (%p1115_p0) target bundleno = 360 (0x168), region = 28  ;;  %s510_s29 = sshll.u32 (!%p1115_p0), %s1021_s19, 7 }
  0x4b   : > { %s149_s30 = scalar_lea.sflag (!%p1115_p0), [#allocation3], %s1021_s19  ;;  %s1025_s3 = scalar_lea.vmem (!%p1115_p0), [#allocation2], %s510_s29 }
  0x51   : > { %827 = dma.done.wait (%p1116_p5), %s149_s30, 2048  }
  0x52   : > { %829 = vsyncadd (%p1116_p5), %s149_s30, 4294965248  ;;  %p1117_p11 = scmp.eq.s32.totalorder %s897_s13, 0 }
  0x54   : > { %831 = dma.done.wait (%p1117_p11), [#allocation6], 2048   ;;  %p1118_p2 = pmov %p1117_p11 }
  0x55   : > { %v196_v0 = vld [vmem:[#allocation5] sm:$0xff]  ;;  %v197_v1 = vld [vmem:[#allocation5 + $0x8] sm:$0xff]  ;;  %v198_v2 = vld [vmem:[#allocation5 + $0x10] sm:$0xff]  ;;  %s512_s15 = sshll.u32 %s1021_s19, 6  ;;  %s551_s5 = sshll.u32 %s897_s13, 10 }
  0x56   : > { %833 = vsyncadd (%p1118_p2), [#allocation6], 4294965248  ;;  %v220_v3 = vpack.c.bf16 %v197_v1, %v196_v0  ;;  %v199_v4 = vld [vmem:[#allocation5 + $0x18] sm:$0xff]  ;;  %v200_v6 = vld [vmem:[#allocation5 + $0x20] sm:$0xff]  ;;  %s176_s17 = scalar_lea.vmem [#allocation7], %s512_s15  ;;  %s1058_s23 = scalar_lea.hbm %s1104_s2, %s551_s5 }
  0x57   : > { %v221_v5 = vpack.c.bf16 %v199_v4, %v198_v2  ;;  %v201_v7 = vld [vmem:[#allocation5 + $0x28] sm:$0xff]  ;;  %v202_v9 = vld [vmem:[#allocation5 + $0x30] sm:$0xff]  ;;  %v180_v10 = vld [vmem:[%s1025_s3] sm:$0xff]  ;;  %s419_s4 = sshll.u32 %s176_s17, 4  ;;  %s406_s13 = scalar_lea.sflag [#allocation4], %s1021_s19  ;;  %s1053_s4 = int_to_ptr.vmem [resolvable:$true] %s419_s4 }
  0x58   : > { %615 = vmatprep.subr.bf16.mxu0 %v220_v3  ;;  %647 = vmatprep.subr.bf16.mxu1 %v220_v3  ;;  %v222_v8 = vpack.c.bf16 %v201_v7, %v200_v6  ;;  %v181_v11 = vld [vmem:[%s1025_s3 + $0x8] sm:$0xff]  ;;  %v203_v12 = vld [vmem:[#allocation5 + $0x38] sm:$0xff]  ;;  %v188_v14 = vld [vmem:[%s1025_s3 + $0x40] sm:$0xff]  ;;  %s782_s28 = scalar_lea.vmem %s1053_s4, 1024  ;;  %s858_s6 = smov [#allocation7]  }
  0x59   : > { %616 = vmatpush3.bf16.msra.mxu0 %v220_v3  ;;  %655 = vmatpush3.bf16.msra.mxu1 %v220_v3  ;;  %v212_v13 = vpack.c.bf16 %v181_v11, %v180_v10  ;;  %v189_v15 = vld [vmem:[%s1025_s3 + $0x48] sm:$0xff]  ;;  %v223_v17 = vpack.c.bf16 %v203_v12, %v202_v9  ;;  %v204_v18 = vld [vmem:[#allocation5 + $0x40] sm:$0xff]  ;;  %v206_v21 = vld [vmem:[#allocation5 + $0x50] sm:$0xff]  ;;  %p783_p4 = scmp.ne.s32.totalorder %s1053_s4, %s782_s28  ;;  %s786_s7 = sshll.u32 %s858_s6, 4  ;;  %s787_s7 = int_to_ptr.vmem [resolvable:$false] %s786_s7 }
  0x5a   : > { %617 = vmatprep.subr.bf16.mxu0 %v221_v5  ;;  %648 = vmatprep.subr.bf16.mxu1 %v221_v5  ;;  %v216_v16 = vpack.c.bf16 %v189_v15, %v188_v14  ;;  %v205_v19 = vld [vmem:[#allocation5 + $0x48] sm:$0xff]  ;;  %v207_v22 = vld [vmem:[#allocation5 + $0x58] sm:$0xff]  ;;  %v208_v24 = vld [vmem:[#allocation5 + $0x60] sm:$0xff]  ;;  %s788_s20 = scalar_lea.vmem %s787_s7, 2048  ;;  %p789_p10 = scmp.lt.s32.totalorder %s1053_s4, %s787_s7 }
  0x5b   : > { %631 = vmatprep.mubr.bf16.mxu0 %v212_v13  ;;  %v224_v20 = vpack.c.bf16 %v205_v19, %v204_v18  ;;  %v225_v23 = vpack.c.bf16 %v207_v22, %v206_v21  ;;  %v209_v25 = vld [vmem:[#allocation5 + $0x68] sm:$0xff]  ;;  %v210_v27 = vld [vmem:[#allocation5 + $0x70] sm:$0xff]  ;;  %v211_v28 = vld [vmem:[#allocation5 + $0x78] sm:$0xff]  ;;  %p784_p6 = pnand %p783_p4, %p970_p12  ;;  %p790_p13 = scmp.lt.s32.totalorder %s788_s20, %s782_s28 }
  0x5c   : > { %639 = vmatprep.mubr.bf16.mxu1 %v216_v16  ;;  %v226_v26 = vpack.c.bf16 %v209_v25, %v208_v24  ;;  %v227_v29 = vpack.c.bf16 %v211_v28, %v210_v27  ;;  %v182_v30 = vld [vmem:[%s1025_s3 + $0x10] sm:$0xff]  ;;  %v183_v31 = vld [vmem:[%s1025_s3 + $0x18] sm:$0xff]  ;;  %v184_v34 = vld [vmem:[%s1025_s3 + $0x20] sm:$0xff] }
  0x5d   : > { %618 = vmatpush3.bf16.msra.mxu0 %v221_v5  ;;  %656 = vmatpush3.bf16.msra.mxu1 %v221_v5  ;;  %v190_v32 = vld [vmem:[%s1025_s3 + $0x50] sm:$0xff]  ;;  %v191_v33 = vld [vmem:[%s1025_s3 + $0x58] sm:$0xff]  ;;  %v185_v35 = vld [vmem:[%s1025_s3 + $0x28] sm:$0xff]  ;;  %v213_v38 = vpack.c.bf16 %v183_v31, %v182_v30  ;;  %p785_p8 = pneg %p784_p6  ;;  %p791_p3 = por %p790_p13, %p789_p10 }
  0x5e   : > { %619 = vmatprep.subr.bf16.mxu0 %v222_v8  ;;  %649 = vmatprep.subr.bf16.mxu1 %v222_v8  ;;  %v192_v36 = vld [vmem:[%s1025_s3 + $0x60] sm:$0xff]  ;;  %v193_v37 = vld [vmem:[%s1025_s3 + $0x68] sm:$0xff]  ;;  %v217_v39 = vpack.c.bf16 %v191_v33, %v190_v32  ;;  %v214_v40 = vpack.c.bf16 %v185_v35, %v184_v34  ;;  %v186_v42 = vld [vmem:[%s1025_s3 + $0x30] sm:$0xff] }
  0x5f   : > { %v218_v41 = vpack.c.bf16 %v193_v37, %v192_v36  ;;  %v187_v43 = vld [vmem:[%s1025_s3 + $0x38] sm:$0xff]  ;;  %v194_v44 = vld [vmem:[%s1025_s3 + $0x70] sm:$0xff]  ;;  %p792_p7 = pnand %p791_p3, %p785_p8 }
  0x60   : > { %v195_v45 = vld [vmem:[%s1025_s3 + $0x78] sm:$0xff]  ;;  %v215_v46 = vpack.c.bf16 %v187_v43, %v186_v42 }
  0x61   : > { %620 = vmatpush3.bf16.msra.mxu0 %v222_v8  ;;  %657 = vmatpush3.bf16.msra.mxu1 %v222_v8  ;;  %v219_v47 = vpack.c.bf16 %v195_v45, %v194_v44 }
  0x62   : > { %621 = vmatprep.subr.bf16.mxu0 %v223_v17  ;;  %650 = vmatprep.subr.bf16.mxu1 %v223_v17 }
  0x65   : > { %622 = vmatpush3.bf16.msra.mxu0 %v223_v17  ;;  %658 = vmatpush3.bf16.msra.mxu1 %v223_v17 }
  0x66   : > { %623 = vmatprep.subr.bf16.mxu0 %v224_v20  ;;  %651 = vmatprep.subr.bf16.mxu1 %v224_v20 }
  0x69   : > { %624 = vmatpush3.bf16.msra.mxu0 %v224_v20  ;;  %659 = vmatpush3.bf16.msra.mxu1 %v224_v20 }
  0x6a   : > { %625 = vmatprep.subr.bf16.mxu0 %v225_v23  ;;  %652 = vmatprep.subr.bf16.mxu1 %v225_v23 }
  0x6d   : > { %626 = vmatpush3.bf16.msra.mxu0 %v225_v23  ;;  %660 = vmatpush3.bf16.msra.mxu1 %v225_v23 }
  0x6e   : > { %627 = vmatprep.subr.bf16.mxu0 %v226_v26  ;;  %653 = vmatprep.subr.bf16.mxu1 %v226_v26 }
  0x71   : > { %628 = vmatpush3.bf16.msra.mxu0 %v226_v26  ;;  %661 = vmatpush3.bf16.msra.mxu1 %v226_v26 }
  0x72   : > { %629 = vmatprep.subr.bf16.mxu0 %v227_v29  ;;  %654 = vmatprep.subr.bf16.mxu1 %v227_v29 }
  0x75   : > { %630 = vmatpush3.bf16.msra.mxu0 %v227_v29  ;;  %662 = vmatpush3.bf16.msra.mxu1 %v227_v29 }
  0x78   : > { %632 = vmatmul.mubr.bf16.vlgmr.msra.gmra.mrb[0].mxu0 %v213_v38  ;;  %640 = vmatmul.mubr.bf16.vlgmr.msra.gmra.mrb[0].mxu1 %v217_v39 }
  0x79   : > { %635 = vmatprep.mubr.bf16.mxu0 %v214_v40  ;;  %643 = vmatprep.mubr.bf16.mxu1 %v218_v41 }
  0x80   : > { %636 = vmatmul.mubr.bf16.gmra.mrb[4].mxu0 %v215_v46  ;;  %644 = vmatmul.mubr.bf16.gmra.mrb[4].mxu1 %v219_v47 }
 0x14b   : > { %v633_v48 = vpop.f32.mrb[0].mxu0  ;;  %v641_v49 = vpop.f32.mrb[0].mxu1 }
 0x14c   : > { %v262_v50 = vpop.f32.mrb[1].mxu0  ;;  %v294_v51 = vpop.f32.mrb[1].mxu1 }
 0x14d   : > { %v634_v52 = vpop.f32.mrb[2].mxu0  ;;  %v642_v53 = vpop.f32.mrb[2].mxu1 }
 0x14e   : > { %v560_v54 = vpack.c.bf16 %v634_v52, %v633_v48  ;;  %v580_v55 = vpack.c.bf16 %v642_v53, %v641_v49  ;;  %v265_v56 = vpop.f32.mrb[3].mxu0  ;;  %v297_v57 = vpop.f32.mrb[3].mxu1 }
 0x14f   : > { %v555_v58 = vpack.c.bf16 %v265_v56, %v262_v50  ;;  %v575_v59 = vpack.c.bf16 %v297_v57, %v294_v51 }
 0x150   : > { %592 = vst [vmem:[%s176_s17 + $0x8] sm:$0xff] %v560_v54   ;;  %596 = vst [vmem:[%s176_s17 + $0x28] sm:$0xff] %v580_v55  }
 0x151   : > { %556 = vst [vmem:[%s176_s17] sm:$0xff] %v555_v58   ;;  %595 = vst [vmem:[%s176_s17 + $0x20] sm:$0xff] %v575_v59  }
 0x153   : > { %v637_v60 = vpop.f32.mrb[4].mxu0  ;;  %v645_v61 = vpop.f32.mrb[4].mxu1 }
 0x154   : > { %v278_v62 = vpop.f32.mrb[5].mxu0  ;;  %v310_v63 = vpop.f32.mrb[5].mxu1 }
 0x155   : > { %v638_v0 = vpop.f32.mrb[6].mxu0  ;;  %v646_v1 = vpop.f32.mrb[6].mxu1 }
 0x156   : > { %v570_v2 = vpack.c.bf16 %v638_v0, %v637_v60  ;;  %v590_v3 = vpack.c.bf16 %v646_v1, %v645_v61  ;;  %v281_v4 = vpop.f32.mrb[7].mxu0  ;;  %v313_v5 = vpop.f32.mrb[7].mxu1 }
 0x157   : > { %v565_v6 = vpack.c.bf16 %v281_v4, %v278_v62  ;;  %v585_v7 = vpack.c.bf16 %v313_v5, %v310_v63 }
 0x158   : > { %594 = vst [vmem:[%s176_s17 + $0x18] sm:$0xff] %v570_v2   ;;  %598 = vst [vmem:[%s176_s17 + $0x38] sm:$0xff] %v590_v3  }
 0x159   : > { %593 = vst [vmem:[%s176_s17 + $0x10] sm:$0xff] %v565_v6   ;;  %597 = vst [vmem:[%s176_s17 + $0x30] sm:$0xff] %v585_v7  }
 0x15a   : > { %795 = shalt.err (!%p792_p7)
}
 0x15b   : > { %s796_s18 = scalar_lea.hbm %s1058_s23, 1024  ;;  %s800_s26 = scalar_lea.hbm %s1104_s2, 2048 }
 0x15c   : > { %p797_p9 = scmp.ne.s32.totalorder %s1058_s23, %s796_s18  ;;  %p801_p5 = scmp.lt.u32.totalorder %s1058_s23, %s1104_s2 }
 0x15d   : > { %p802_p11 = scmp.lt.u32.totalorder %s800_s26, %s796_s18  ;;  %p804_p4 = scmp.lt.u32.totalorder %s796_s18, %s1058_s23 }
 0x15e   : > { %p798_p1 = pnand %p797_p9, %p970_p12 }
 0x15f   : > { %p803_p2 = por %p802_p11, %p801_p5 }
 0x160   : > { %p799_p0 = pneg %p798_p1 }
 0x161   : > { %p805_p6 = por %p804_p4, %p803_p2 }
 0x163   : > { %p806_p8 = pnand %p805_p6, %p799_p0 }
 0x165   : > { %809 = shalt.err (!%p806_p8)
}
 0x166   : > { %s859_s3 = smov 64   ;;  %s860_s15 = smov 4  }
 0x167   : > { %669 = dma.vmem_to_hbm [thread:$0]  (%p970_p12), %s1053_s4, 1024, %s1058_s23, %s406_s13, %s859_s3, %s859_s3, %s860_s15  }
 0x168 PF: > { %s434_s17 = sand.u32 1, %s840_s9   ;;  %p1119_p10 = scmp.ne.s32.totalorder %s1109_s16, 0 }
 0x169   : > { %p1120_p13 = scmp.ge.s32.totalorder %s852_s12, 2  ;;  %s435_s5 = scalar_lea.sflag [#allocation4], %s434_s17 }
 0x16b   : > { %p680_p3 = pnand %p1120_p13, %p1119_p10 }
 0x16d   : > { %835 = dma.done.wait (!%p680_p3), %s435_s5, 1024  }
 0x16e   : > { %837 = vsyncadd (!%p680_p3), %s435_s5, 4294966272  ;;  %p16_p7 = scmp.ge.s32.totalorder %s932_s21, 4   ;;  %s1121_s9 = smov %s844_s10 }
 0x16f   : > { %s1122_s10 = smov %s848_s11  ;;  %s1123_s11 = smov %s966_s8 }
 0x170   : > { %s1124_s12 = smov %s932_s21  ;;  %18 = sbr.rel (!%p16_p7) target bundleno = 6 (0x6), region = 77 }
 0x177   :  { %440 = vsyncpa [#allocation3], 1 }
 0x178   :  { %442 = vsyncpa [#allocation3 + $0x1], 1 }
 0x179   :  { %443 = vsyncpa [#allocation6], 1 }
 0x17a   :  { %444 = vsyncpa [#allocation4], 1 }
 0x17b   :  { %446 = vsyncpa [#allocation4 + $0x1], 1 }

</bundles_post_ra>
